<compile_context>
chip_gen: v5e
topology: v5e:2x2
jax: 0.10.0
libtpu: 0.0.40
codegen_flags: <defaults>
</compile_context>

<pallas_src>
import functools

import jax
import jax.numpy as jnp
import numpy as np
from jax.experimental import pallas as pl
from jax.experimental.pallas import tpu as pltpu


def _line_loss_kernel(nvalid_ref, src_ref, tgt_ref, lbl_ref, out_ref, *, blk):
    i = pl.program_id(0)

    src = src_ref[...].astype(jnp.float32)
    tgt = tgt_ref[...].astype(jnp.float32)

    # inner_product = sum(source_embed * target_embed, dim=1)   -> (BLK, 1)
    inner = jnp.sum(src * tgt, axis=1, keepdims=True)
    # pos_neg = label * inner_product
    pos_neg = lbl_ref[...] * inner
    # numerically-stable logsigmoid(x) = min(x, 0) - log1p(exp(-|x|))
    log_sig = jnp.minimum(pos_neg, 0.0) - jnp.log1p(jnp.exp(-jnp.abs(pos_neg)))

    # In-kernel padding mask (no mask stream from HBM): rows whose global index
    # is >= the true batch size are padding.
    row = jax.lax.broadcasted_iota(jnp.int32, (blk, 1), 0) + i * blk
    mask = (row < nvalid_ref[0]).astype(jnp.float32)

    # One partial sum per grid block; the cross-block reduce / mean / negate
    # happens in the wrapper (keeps the grid axis fully parallel).
    out_ref[...] = jnp.sum(log_sig * mask, keepdims=True)


def _choose_blk(batch, dim, itemsize, target_rows=1024,
                vmem_budget_bytes=12 << 20):
    # 2 (src, tgt) streams x 2 pipeline buffers x BLK*dim*itemsize <= budget.
    max_rows = vmem_budget_bytes // max(1, 4 * dim * itemsize)
    blk = int(min(target_rows, max(16, max_rows)))
    blk = max(16, (blk // 16) * 16)          # sublane multiple (bf16-safe)
    b_pad = ((batch + 15) // 16) * 16        # never bigger than the padded batch
    return min(blk, b_pad)


@functools.partial(jax.jit, static_argnames=("order", "stream_bf16"))
def line_forward(nodes_embed, context_nodes_embed, source_node, target_node,
                 label, *, order, stream_bf16=False):
    # --- glue: embedding gather + padding (plain JAX) ---
    src = jnp.take(nodes_embed, source_node, axis=0)
    table = nodes_embed if order == 1 else context_nodes_embed
    tgt = jnp.take(table, target_node, axis=0)
    if stream_bf16:
        # Halves HBM traffic of the two dominant streams; math stays f32
        # in-kernel (numerics then differ slightly from the f32 module).
        src = src.astype(jnp.bfloat16)
        tgt = tgt.astype(jnp.bfloat16)

    B, D = src.shape
    blk = _choose_blk(B, D, src.dtype.itemsize)
    nblk = pl.cdiv(B, blk)
    Bp = nblk * blk
    pad = Bp - B

    src = jnp.pad(src, ((0, pad), (0, 0)))
    tgt = jnp.pad(tgt, ((0, pad), (0, 0)))
    lbl = jnp.pad(label.astype(jnp.float32), (0, pad)).reshape(Bp, 1)
    nvalid = jnp.array([B], jnp.int32)       # scalar-prefetch: true batch size

    cost = pl.CostEstimate(
        flops=3 * B * D,
        transcendentals=2 * B,
        bytes_accessed=2 * Bp * D * src.dtype.itemsize + Bp * 4 + nblk * 4,
    )

    partials = pl.pallas_call(
        functools.partial(_line_loss_kernel, blk=blk),
        out_shape=jax.ShapeDtypeStruct((nblk, 1), jnp.float32),
        grid_spec=pltpu.PrefetchScalarGridSpec(
            num_scalar_prefetch=1,
            grid=(nblk,),
            in_specs=[
                pl.BlockSpec((blk, D), lambda i, nv: (i, 0)),
                pl.BlockSpec((blk, D), lambda i, nv: (i, 0)),
                pl.BlockSpec((blk, 1), lambda i, nv: (i, 0)),
            ],
            out_specs=pl.BlockSpec((1, 1), lambda i, nv: (i, 0)),
        ),
        compiler_params=pltpu.CompilerParams(
            dimension_semantics=("parallel",)),
        cost_estimate=cost,
    )(nvalid, src, tgt, lbl)

    # Tiny epilogue: sum partials over blocks, mean over real rows, negate.
    return -(jnp.sum(partials) / jnp.float32(max(B, 1)))


def reference_loss(nodes_embed, context_nodes_embed, source_node, target_node,
                   label, order):
    src = np.asarray(nodes_embed)[np.asarray(source_node)]
    table = nodes_embed if order == 1 else context_nodes_embed
    tgt = np.asarray(table)[np.asarray(target_node)]
    inner = np.sum(src * tgt, axis=1)
    pos_neg = np.asarray(label) * inner
    log_sig = np.minimum(pos_neg, 0.0) - np.log1p(np.exp(-np.abs(pos_neg)))
    return -np.mean(log_sig)


if __name__ == "__main__":
    key = jax.random.PRNGKey(0)
    k_nodes, k_ctx, k_src, k_tgt = jax.random.split(key, 4)

    n, dim, order = 32, 32, 2          # Line(n=32, dim=32, order=2)
    num_sources, K = 2, 5              # each source: 1 positive + K negatives
    B = num_sources * (K + 1)          # batch of (source, target, label) triples

    nodes_embed = jax.random.uniform(k_nodes, (n, dim), jnp.float32, -1.0, 1.0)
    context_nodes_embed = jax.random.uniform(k_ctx, (n, dim), jnp.float32,
                                             -1.0, 1.0)

    src_ids = jax.random.randint(k_src, (num_sources,), 0, n)
    source_node = jnp.repeat(src_ids, K + 1)                       # (B,)
    target_node = jax.random.randint(k_tgt, (B,), 0, n)            # (B,)
    label = jnp.tile(jnp.array([1.0] + [-1.0] * K, jnp.float32),
                     num_sources)                                  # (B,)

    loss = line_forward(nodes_embed, context_nodes_embed, source_node,
                        target_node, label, order=order)
    loss = jax.block_until_ready(loss)

    ref = reference_loss(nodes_embed, context_nodes_embed, source_node,
                         target_node, label, order)
    np.testing.assert_allclose(np.asarray(loss), ref, rtol=1e-5, atol=1e-6)

    print("KERNEL_OK")
</pallas_src>

<mosaic_0001>
module attributes {stable_mosaic.version = 11 : i64} {
  func.func @_line_loss_kernel(%arg0: i32, %arg1: memref<1xi32, #tpu.memory_space<smem>>, %arg2: memref<16x32xf32, #tpu.memory_space<vmem>>, %arg3: memref<16x32xf32, #tpu.memory_space<vmem>>, %arg4: memref<16x1xf32, #tpu.memory_space<vmem>>, %arg5: memref<1x1xf32, #tpu.memory_space<vmem>>) attributes {dimension_semantics = [#tpu.dimension_semantics<parallel>], iteration_bounds = array<i64: 1>, scalar_prefetch = 1 : i64, scratch_operands = 0 : i64, tpu.core_type = #tpu.core_type<tc>, window_params = [{transform_indices = @transform_0, window_bounds = array<i64: 16, 32>}, {transform_indices = @transform_1, window_bounds = array<i64: 16, 32>}, {transform_indices = @transform_2, window_bounds = array<i64: 16, 1>}, {transform_indices = @transform_3, window_bounds = array<i64: 1, 1>}]} {
    %c0 = arith.constant 0 : index
    %c0_0 = arith.constant 0 : index
    %0 = vector.load %arg2[%c0, %c0_0] : memref<16x32xf32, #tpu.memory_space<vmem>>, vector<16x32xf32>
    %c0_1 = arith.constant 0 : index
    %c0_2 = arith.constant 0 : index
    %1 = vector.load %arg3[%c0_1, %c0_2] : memref<16x32xf32, #tpu.memory_space<vmem>>, vector<16x32xf32>
    %2 = arith.mulf %0, %1 : vector<16x32xf32>
    %cst = arith.constant dense<0.000000e+00> : vector<16xf32>
    %3 = vector.multi_reduction <add>, %2, %cst [1] : vector<16x32xf32> to vector<16xf32>
    %4 = vector.shape_cast %3 : vector<16xf32> to vector<16x1xf32>
    %c0_3 = arith.constant 0 : index
    %c0_4 = arith.constant 0 : index
    %5 = vector.load %arg4[%c0_3, %c0_4] : memref<16x1xf32, #tpu.memory_space<vmem>>, vector<16x1xf32>
    %6 = arith.mulf %5, %4 : vector<16x1xf32>
    %cst_5 = arith.constant 0.000000e+00 : f32
    %7 = vector.broadcast %cst_5 : f32 to vector<16x1xf32>
    %8 = arith.minimumf %6, %7 : vector<16x1xf32>
    %9 = math.absf %6 : vector<16x1xf32>
    %cst_6 = arith.constant 0.000000e+00 : f32
    %10 = vector.broadcast %cst_6 : f32 to vector<16x1xf32>
    %11 = arith.subf %10, %9 : vector<16x1xf32>
    %12 = math.exp %11 : vector<16x1xf32>
    %13 = math.log1p %12 : vector<16x1xf32>
    %14 = arith.subf %8, %13 : vector<16x1xf32>
    %15 = tpu.iota {dimensions = array<i32: 0>} : vector<16x1xi32>
    %c16_i32 = arith.constant 16 : i32
    %16 = arith.muli %arg0, %c16_i32 : i32
    %17 = vector.broadcast %16 : i32 to vector<16x1xi32>
    %18 = arith.addi %15, %17 : vector<16x1xi32>
    %c0_7 = arith.constant 0 : index
    %19 = memref.load %arg1[%c0_7] : memref<1xi32, #tpu.memory_space<smem>>
    %20 = vector.broadcast %19 : i32 to vector<16x1xi32>
    %21 = arith.cmpi slt, %18, %20 : vector<16x1xi32>
    %22 = arith.extui %21 : vector<16x1xi1> to vector<16x1xi32>
    %23 = arith.sitofp %22 : vector<16x1xi32> to vector<16x1xf32>
    %24 = arith.mulf %14, %23 : vector<16x1xf32>
    %25 = vector.shape_cast %24 : vector<16x1xf32> to vector<1x16x1xf32>
    %cst_8 = arith.constant dense<0.000000e+00> : vector<1xf32>
    %26 = vector.multi_reduction <add>, %25, %cst_8 [1, 2] : vector<1x16x1xf32> to vector<1xf32>
    %27 = vector.shape_cast %26 : vector<1xf32> to vector<1x1x1xf32>
    %28 = vector.extract %27[0, 0, 0] : f32 from vector<1x1x1xf32>
    %29 = vector.broadcast %28 : f32 to vector<1x1xf32>
    %c0_9 = arith.constant 0 : index
    %c0_10 = arith.constant 0 : index
    %30 = vector.load %arg5[%c0_9, %c0_10] : memref<1x1xf32, #tpu.memory_space<vmem>>, vector<1x1xf32>
    tpu.vector_store %arg5[%c0_9, %c0_10], %29 {strides = array<i32>} : memref<1x1xf32, #tpu.memory_space<vmem>>, vector<1x1xf32>,
    return
  }
  func.func @transform_0(%arg0: i32, %arg1: memref<1xi32, #tpu.memory_space<smem>>) -> (i32, i32) {
    %c0_i32 = arith.constant 0 : i32
    %c0_i32_0 = arith.constant 0 : i32
    return %arg0, %c0_i32 : i32, i32
  }
  func.func @transform_1(%arg0: i32, %arg1: memref<1xi32, #tpu.memory_space<smem>>) -> (i32, i32) {
    %c0_i32 = arith.constant 0 : i32
    %c0_i32_0 = arith.constant 0 : i32
    return %arg0, %c0_i32 : i32, i32
  }
  func.func @transform_2(%arg0: i32, %arg1: memref<1xi32, #tpu.memory_space<smem>>) -> (i32, i32) {
    %c0_i32 = arith.constant 0 : i32
    %c0_i32_0 = arith.constant 0 : i32
    return %arg0, %c0_i32 : i32, i32
  }
  func.func @transform_3(%arg0: i32, %arg1: memref<1xi32, #tpu.memory_space<smem>>) -> (i32, i32) {
    %c0_i32 = arith.constant 0 : i32
    %c0_i32_0 = arith.constant 0 : i32
    return %arg0, %c0_i32 : i32, i32
  }
}

</mosaic_0001>

<bundles_post_ra>
// kernel: line_forward.1
= control target key start
LH: loop header
LB: loop body
LE: loop exit
PB: predicated region body
PF: predicated region fallthrough
CT: control target
= control target key end

     0   :  { %vm23_vm0 = vcmask 261120   ;;  %s204_s0 = inlined_call_operand.<no memory space> [shape: s32[1], index: 0, kind: input, shape index: {}]   ;;  %s205_s1 = inlined_call_operand.vmem [shape: f32[16,32], index: 1, kind: input, shape index: {}]   ;;  %s206_s2 = inlined_call_operand.vmem [shape: f32[16,32], index: 2, kind: input, shape index: {}]   ;;  %s207_s3 = inlined_call_operand.vmem [shape: f32[16,1], index: 3, kind: input, shape index: {}]   ;;  %s208_s4 = inlined_call_operand.hbm [shape: f32[1,1], index: 4, kind: output, shape index: {}]  }
   0x1   :  { %v17_v0 = vld [vmem:[%s205_s1] sm:$0xff] }
   0x2   :  { %v19_v1 = vld [vmem:[%s206_s2] sm:$0xff] }
   0x3   :  { %v21_v2 = vmul.f32 %v19_v1, %v17_v0 }
   0x4   :  { %10 = vsyncpa [#allocation5], 0  ;;  %v18_v3 = vld [vmem:[%s205_s1 + $0x8] sm:$0xff]  ;;  %v30_v8 = vld [vmem:[%s207_s3] sm:$0xff]  ;;  %v64_v23 = vlaneseq  ;;  %v72_v33 = vstv %s204_s0  ;;  %v153_v43 = vmov 0.0   ;;  %vm81_vm5 = vcmask 7168  }
   0x5   :  { %v20_v4 = vld [vmem:[%s206_s2 + $0x8] sm:$0xff]  ;;  %v24_v5 = vsel %vm23_vm0, %v21_v2, 0.0  ;;  %s154_s0 = smov [#allocation4]   ;;  %s104_s29 = sshll.u32 %s208_s4, 4  ;;  %vm95_vm6 = vcmask 0   ;;  %s105_s29 = int_to_ptr.hbm [resolvable:$true] %s104_s29 }
   0x6   :  { %25 = vadd.xlane.f32.xlu0 %v24_v5  ;;  %v22_v6 = vmul.f32 %v20_v4, %v18_v3  ;;  %v31_v13 = vld [vmem:[%s207_s3 + $0x8] sm:$0xff]  ;;  %v65_v31 = vshrl.u32 %v64_v23, 7  ;;  %s102_s3 = sshll.u32 %s154_s0, 4  ;;  %s103_s3 = int_to_ptr.vmem [resolvable:$true] %s102_s3 }
   0x8   :  { %v27_v7 = vsel %vm23_vm0, %v22_v6, 0.0  ;;  %v66_v34 = vadd.s32 8, %v65_v31  ;;  %vm73_vm2 = vcmp.lt.s32.totalorder %v65_v31, %v72_v33 }
   0x9   :  { %v113_v44 = vsel %vm73_vm2, 1.0, %v153_v43 }
   0xa   :  { %vm74_vm3 = vcmp.lt.s32.totalorder %v66_v34, %v72_v33 }
   0xb   :  { %v114_v47 = vsel %vm74_vm3, 1.0, %v153_v43 }
   0xe   :  { %28 = vadd.xlane.f32.xlu0 %v27_v7 }
  0x79   :  { %v26_v9 = vpop.xlane.xlu0 %25 }
  0x7a   :  { %v32_v10 = vmul.f32 %v30_v8, %v26_v9 }
  0x7c   :  { %v36_v11 = vand.u32 2147483647, %v32_v10  ;;  %v34_v37 = vmin.f32 %v32_v10, 0.0 }
  0x7e   :  { %v38_v12 = vsub.f32 0.0, %v36_v11 }
  0x80   :  { %v40_v14 = vmul.f32 1.442695, %v38_v12 }
  0x81   :  { %v29_v15 = vpop.xlane.xlu0 %28 }
  0x82   :  { %119 = vpow2.f32 %v40_v14  ;;  %v33_v16 = vmul.f32 %v31_v13, %v29_v15 }
  0x84   :  { %v37_v17 = vand.u32 2147483647, %v33_v16  ;;  %v35_v45 = vmin.f32 %v33_v16, 0.0 }
  0x86   :  { %v39_v18 = vsub.f32 0.0, %v37_v17 }
  0x88   :  { %v120_v19 = vpop.eup %119  ;;  %v42_v20 = vmul.f32 1.442695, %v39_v18 }
  0x89   :  { %v44_v21 = vadd.f32 1.0, %v120_v19  ;;  %v47_v22 = vmul.f32 -0.5, %v120_v19  ;;  %v50_v27 = vand.u32 2147483647, %v120_v19 }
  0x8a   :  { %121 = vpow2.f32 %v42_v20 }
  0x8b   :  { %123 = vlog2.f32 %v44_v21  ;;  %v48_v25 = vadd.f32 1.0, %v47_v22  ;;  %vm51_vm1 = vcmp.lt.f32.partialorder %v50_v27, 0.0004427343 }
  0x8d   :  { %v49_v32 = vmul.f32 %v120_v19, %v48_v25 }
  0x90   :  { %v122_v24 = vpop.eup %121 }
  0x91   :  { %v124_v26 = vpop.eup %123  ;;  %v53_v28 = vadd.f32 1.0, %v122_v24  ;;  %v56_v30 = vmul.f32 -0.5, %v122_v24  ;;  %v59_v38 = vand.u32 2147483647, %v122_v24 }
  0x92   :  { %v46_v29 = vmul.f32 0.6931472, %v124_v26 }
  0x93   :  { %125 = vlog2.f32 %v53_v28  ;;  %v57_v36 = vadd.f32 1.0, %v56_v30  ;;  %vm60_vm4 = vcmp.lt.f32.partialorder %v59_v38, 0.0004427343 }
  0x94   :  { %v52_v35 = vsel %vm51_vm1, %v49_v32, %v46_v29 }
  0x95   :  { %v62_v40 = vsub.f32 %v34_v37, %v52_v35  ;;  %v58_v42 = vmul.f32 %v122_v24, %v57_v36 }
  0x97   :  { %v79_v49 = vmul.f32 %v113_v44, %v62_v40 }
  0x99   :  { %v126_v39 = vpop.eup %125  ;;  %v82_v51 = vsel %vm81_vm5, %v79_v49, 0.0 }
  0x9a   :  { %v55_v41 = vmul.f32 0.6931472, %v126_v39 }
  0x9c   :  { %v61_v46 = vsel %vm60_vm4, %v58_v42, %v55_v41 }
  0x9d   :  { %v63_v48 = vsub.f32 %v35_v45, %v61_v46 }
  0x9f   :  { %v80_v50 = vmul.f32 %v114_v47, %v63_v48 }
  0xa1   :  { %v83_v52 = vsel %vm81_vm5, %v80_v50, 0.0 }
  0xa2   :  { %v84_v53 = vadd.f32 %v83_v52, %v82_v51 }
  0xa4   :  { %85 = vadd.xlane.f32.xlu1 %v84_v53 }
 0x117   :  { %v86_v54 = vpop.xlane.xlu1 %85 }
 0x118   :  { %v87_v55 = vrot.slane %v86_v54, 4 }
 0x11a   :  { %v88_v56 = vadd.f32 %v87_v55, %v86_v54 }
 0x11c   :  { %v89_v57 = vrot.slane %v88_v56, 2 }
 0x11e   :  { %v90_v58 = vadd.f32 %v89_v57, %v88_v56 }
 0x120   :  { %v91_v59 = vrot.slane %v90_v58, 1 }
 0x122   :  { %v92_v60 = vadd.f32 %v91_v59, %v90_v58 }
 0x124   :  { %115 = vpush %v92_v60 }
 0x155   :  { %s116_s30 = spop %115 }
 0x156   :  { %v94_v61 = vstv %s116_s30 }
 0x157   :  { %96 = vst.msk [vmem:[#allocation4] sm:$0x1] %vm95_vm6, %v94_v61 }
 0x158   :  { %107 = dma.vmem_to_hbm [thread:$0]  %s103_s3, 16, %s105_s29, [#allocation5]  }
 0x159   :  { %151 = dma.done.wait [#allocation5], 16  }
 0x15a   :  { %152 = vsyncadd [#allocation5], 4294967280 }
 0x15b   :  { %112 = vsyncpa [#allocation5], 1 }

</bundles_post_ra>
